<compile_context>
chip_gen: v7x
topology: tpu7x:2x2x1
jax: 0.10.0
libtpu: 0.0.40
codegen_flags: <defaults>
</compile_context>

<pallas_src>
import jax
import jax.numpy as jnp
from jax.experimental import pallas as pl
from jax.experimental.pallas import tpu as pltpu

LANE = 128      # TPU lane width (last-dim tile)
SUBLANE = 8     # f32 sublane tile (second-to-last-dim tile)


def _round_up(x, m):
    return ((x + m - 1) // m) * m


def _mlp_kernel(x_ref, w1_ref, b1_ref, w2_ref, b2_ref, w3_ref, b3_ref,
                w4_ref, b4_ref, out_ref):
    """4-layer MLP on one (TB, 128) activation tile; all weights VMEM-resident."""
    h = jnp.dot(x_ref[...], w1_ref[...], preferred_element_type=jnp.float32) + b1_ref[...]
    h = jnp.maximum(h, 0.0)

    h = jnp.dot(h, w2_ref[...], preferred_element_type=jnp.float32) + b2_ref[...]
    h = jnp.maximum(h, 0.0)

    h = jnp.dot(h, w3_ref[...], preferred_element_type=jnp.float32) + b3_ref[...]
    h = jnp.maximum(h, 0.0)

    y = jnp.dot(h, w4_ref[...], preferred_element_type=jnp.float32) + b4_ref[...]
    out_ref[...] = y.astype(out_ref.dtype)


def _pad_params(params):
    """Zero-pad (fan_in, fan_out) weights to (128, 128) and biases to (1, 128)."""
    padded = []
    for w, b in params:
        fan_in, fan_out = w.shape
        wp = jnp.zeros((LANE, LANE), jnp.float32).at[:fan_in, :fan_out].set(
            w.astype(jnp.float32))
        bp = jnp.zeros((1, LANE), jnp.float32).at[:, :fan_out].set(
            b.reshape(1, -1).astype(jnp.float32))
        padded.append((wp, bp))
    return padded


def dynamics_model_forward_batch(s, a, params, *, block_b=128):
    """Batched forward.  s: (B, obs_dim), a: (B, n_actions) -> (B, obs_dim)."""
    B, obs_dim = s.shape
    n_actions = a.shape[1]
    D = obs_dim + n_actions
    if D > LANE or obs_dim > LANE:
        # TODO(synk): tile the feature dimension for models with D > 128.
        raise NotImplementedError("feature dim > 128 not supported by this kernel")

    # Batch tile: multiple of the sublane tile; 128 rows when the batch is big enough.
    tb = block_b if B >= block_b else _round_up(B, SUBLANE)
    B_pad = _round_up(B, tb)

    # Build the lane-dense padded input (B_pad, 128): [s | a | zeros].
    x = jnp.concatenate([s.astype(jnp.float32), a.astype(jnp.float32)], axis=1)  # (B, D)
    x = jnp.pad(x, ((0, B_pad - B), (0, LANE - D)))                              # (B_pad, 128)

    (w1, b1), (w2, b2), (w3, b3), (w4, b4) = _pad_params(params)

    grid = (B_pad // tb,)
    x_spec = pl.BlockSpec((tb, LANE), lambda i: (i, 0))
    w_spec = pl.BlockSpec((LANE, LANE), lambda i: (0, 0))   # constant -> stays VMEM-resident
    b_spec = pl.BlockSpec((1, LANE), lambda i: (0, 0))
    out_spec = pl.BlockSpec((tb, LANE), lambda i: (i, 0))   # lane-dense output (128 wide)

    out = pl.pallas_call(
        _mlp_kernel,
        out_shape=jax.ShapeDtypeStruct((B_pad, LANE), jnp.float32),
        grid=grid,
        in_specs=[x_spec,
                  w_spec, b_spec,
                  w_spec, b_spec,
                  w_spec, b_spec,
                  w_spec, b_spec],
        out_specs=out_spec,
        compiler_params=pltpu.CompilerParams(
            dimension_semantics=("parallel",)),   # split batch across TCs on v7x
    )(x, w1, b1, w2, b2, w3, b3, w4, b4)

    return out[:B, :obs_dim]


def dynamics_model_forward(s, a, params):
    """Single-sample forward matching DynamicsModel.forward: s (obs_dim,), a (n_actions,)."""
    return dynamics_model_forward_batch(s[None, :], a[None, :], params)[0]


def init_params(key, obs_dim, n_actions):
    """Deterministic synthetic parameters with the shapes implied by __init__.

    Weights stored as (in_features, out_features); PyTorch's nn.Linear stores (out, in),
    i.e. these are the transposed equivalents.
    """
    D = obs_dim + n_actions
    dims = [(D, D), (D, D), (D, D), (D, obs_dim)]
    params = []
    for (fan_in, fan_out) in dims:
        key, kw, kb = jax.random.split(key, 3)
        bound = 1.0 / jnp.sqrt(fan_in)
        w = jax.random.uniform(kw, (fan_in, fan_out), jnp.float32, -bound, bound)
        b = jax.random.uniform(kb, (1, fan_out), jnp.float32, -bound, bound)
        params.append((w, b))
    return params


def _reference_forward_batch(s, a, params):
    """Pure-JAX reference of the same (batched) forward pass."""
    x = jnp.concatenate([s, a], axis=1).astype(jnp.float32)
    (w1, b1), (w2, b2), (w3, b3), (w4, b4) = params
    h = jnp.maximum(x @ w1 + b1, 0.0)
    h = jnp.maximum(h @ w2 + b2, 0.0)
    h = jnp.maximum(h @ w3 + b3, 0.0)
    return h @ w4 + b4


if __name__ == "__main__":
    # Shapes consistent with the module: 4-dim observation space, 4 discrete actions -> D = 8.
    obs_dim, n_actions = 4, 4
    batch = 128  # fills a full MXU/sublane tile; amortizes launch + weight DMA

    key = jax.random.PRNGKey(0)
    key, ks, ka = jax.random.split(key, 3)
    s_batch = jax.random.normal(ks, (batch, obs_dim), jnp.float32)
    a_idx = jax.random.randint(ka, (batch,), 0, n_actions)
    a_batch = jax.nn.one_hot(a_idx, n_actions, dtype=jnp.float32)   # one-hot actions, as DynaQ feeds them

    params = init_params(key, obs_dim, n_actions)

    # Batched path (primary, performance-oriented).
    out_batch = dynamics_model_forward_batch(s_batch, a_batch, params)
    out_batch = jax.block_until_ready(out_batch)
    ref_batch = _reference_forward_batch(s_batch, a_batch, params)
    assert out_batch.shape == (batch, obs_dim)
    assert jnp.allclose(out_batch, ref_batch, atol=1e-5, rtol=1e-5)

    # Single-sample path (exact DynamicsModel.forward signature).
    out_single = dynamics_model_forward(s_batch[0], a_batch[0], params)
    out_single = jax.block_until_ready(out_single)
    assert out_single.shape == (obs_dim,)
    assert jnp.allclose(out_single, ref_batch[0], atol=1e-5, rtol=1e-5)

    print("KERNEL_OK")
</pallas_src>

<mosaic_0001>
module attributes {stable_mosaic.version = 11 : i64} {
  func.func @_mlp_kernel(%arg0: i32, %arg1: memref<128x128xf32, #tpu.memory_space<vmem>>, %arg2: memref<128x128xf32, #tpu.memory_space<vmem>>, %arg3: memref<1x128xf32, #tpu.memory_space<vmem>>, %arg4: memref<128x128xf32, #tpu.memory_space<vmem>>, %arg5: memref<1x128xf32, #tpu.memory_space<vmem>>, %arg6: memref<128x128xf32, #tpu.memory_space<vmem>>, %arg7: memref<1x128xf32, #tpu.memory_space<vmem>>, %arg8: memref<128x128xf32, #tpu.memory_space<vmem>>, %arg9: memref<1x128xf32, #tpu.memory_space<vmem>>, %arg10: memref<128x128xf32, #tpu.memory_space<vmem>>) attributes {dimension_semantics = [#tpu.dimension_semantics<parallel>], iteration_bounds = array<i64: 1>, scalar_prefetch = 0 : i64, scratch_operands = 0 : i64, tpu.core_type = #tpu.core_type<tc>, window_params = [{transform_indices = @transform_0, window_bounds = array<i64: 128, 128>}, {pipeline_mode = #tpu.pipeline_mode<synchronous>, transform_indices = @transform_1, window_bounds = array<i64: 128, 128>}, {pipeline_mode = #tpu.pipeline_mode<synchronous>, transform_indices = @transform_2, window_bounds = array<i64: 1, 128>}, {pipeline_mode = #tpu.pipeline_mode<synchronous>, transform_indices = @transform_3, window_bounds = array<i64: 128, 128>}, {pipeline_mode = #tpu.pipeline_mode<synchronous>, transform_indices = @transform_4, window_bounds = array<i64: 1, 128>}, {pipeline_mode = #tpu.pipeline_mode<synchronous>, transform_indices = @transform_5, window_bounds = array<i64: 128, 128>}, {pipeline_mode = #tpu.pipeline_mode<synchronous>, transform_indices = @transform_6, window_bounds = array<i64: 1, 128>}, {pipeline_mode = #tpu.pipeline_mode<synchronous>, transform_indices = @transform_7, window_bounds = array<i64: 128, 128>}, {pipeline_mode = #tpu.pipeline_mode<synchronous>, transform_indices = @transform_8, window_bounds = array<i64: 1, 128>}, {transform_indices = @transform_9, window_bounds = array<i64: 128, 128>}]} {
    %c0 = arith.constant 0 : index
    %c0_0 = arith.constant 0 : index
    %0 = vector.load %arg1[%c0, %c0_0] : memref<128x128xf32, #tpu.memory_space<vmem>>, vector<128x128xf32>
    %c0_1 = arith.constant 0 : index
    %c0_2 = arith.constant 0 : index
    %1 = vector.load %arg2[%c0_1, %c0_2] : memref<128x128xf32, #tpu.memory_space<vmem>>, vector<128x128xf32>
    %cst = arith.constant dense<0.000000e+00> : vector<128x128xf32>
    %2 = tpu.matmul %0, %1, %cst {dimension_numbers = #tpu.dot_dimension_numbers<[1], [0], [0], [1], [0, 0, 1, 1], [], []>} : vector<128x128xf32>, vector<128x128xf32>, vector<128x128xf32> -> vector<128x128xf32>
    %c0_3 = arith.constant 0 : index
    %c0_4 = arith.constant 0 : index
    %3 = vector.load %arg3[%c0_3, %c0_4] : memref<1x128xf32, #tpu.memory_space<vmem>>, vector<1x128xf32>
    %4 = vector.broadcast %3 : vector<1x128xf32> to vector<128x128xf32>
    %5 = arith.addf %2, %4 : vector<128x128xf32>
    %cst_5 = arith.constant 0.000000e+00 : f32
    %6 = vector.broadcast %cst_5 : f32 to vector<128x128xf32>
    %7 = arith.maximumf %5, %6 : vector<128x128xf32>
    %c0_6 = arith.constant 0 : index
    %c0_7 = arith.constant 0 : index
    %8 = vector.load %arg4[%c0_6, %c0_7] : memref<128x128xf32, #tpu.memory_space<vmem>>, vector<128x128xf32>
    %cst_8 = arith.constant dense<0.000000e+00> : vector<128x128xf32>
    %9 = tpu.matmul %7, %8, %cst_8 {dimension_numbers = #tpu.dot_dimension_numbers<[1], [0], [0], [1], [0, 0, 1, 1], [], []>} : vector<128x128xf32>, vector<128x128xf32>, vector<128x128xf32> -> vector<128x128xf32>
    %c0_9 = arith.constant 0 : index
    %c0_10 = arith.constant 0 : index
    %10 = vector.load %arg5[%c0_9, %c0_10] : memref<1x128xf32, #tpu.memory_space<vmem>>, vector<1x128xf32>
    %11 = vector.broadcast %10 : vector<1x128xf32> to vector<128x128xf32>
    %12 = arith.addf %9, %11 : vector<128x128xf32>
    %cst_11 = arith.constant 0.000000e+00 : f32
    %13 = vector.broadcast %cst_11 : f32 to vector<128x128xf32>
    %14 = arith.maximumf %12, %13 : vector<128x128xf32>
    %c0_12 = arith.constant 0 : index
    %c0_13 = arith.constant 0 : index
    %15 = vector.load %arg6[%c0_12, %c0_13] : memref<128x128xf32, #tpu.memory_space<vmem>>, vector<128x128xf32>
    %cst_14 = arith.constant dense<0.000000e+00> : vector<128x128xf32>
    %16 = tpu.matmul %14, %15, %cst_14 {dimension_numbers = #tpu.dot_dimension_numbers<[1], [0], [0], [1], [0, 0, 1, 1], [], []>} : vector<128x128xf32>, vector<128x128xf32>, vector<128x128xf32> -> vector<128x128xf32>
    %c0_15 = arith.constant 0 : index
    %c0_16 = arith.constant 0 : index
    %17 = vector.load %arg7[%c0_15, %c0_16] : memref<1x128xf32, #tpu.memory_space<vmem>>, vector<1x128xf32>
    %18 = vector.broadcast %17 : vector<1x128xf32> to vector<128x128xf32>
    %19 = arith.addf %16, %18 : vector<128x128xf32>
    %cst_17 = arith.constant 0.000000e+00 : f32
    %20 = vector.broadcast %cst_17 : f32 to vector<128x128xf32>
    %21 = arith.maximumf %19, %20 : vector<128x128xf32>
    %c0_18 = arith.constant 0 : index
    %c0_19 = arith.constant 0 : index
    %22 = vector.load %arg8[%c0_18, %c0_19] : memref<128x128xf32, #tpu.memory_space<vmem>>, vector<128x128xf32>
    %cst_20 = arith.constant dense<0.000000e+00> : vector<128x128xf32>
    %23 = tpu.matmul %21, %22, %cst_20 {dimension_numbers = #tpu.dot_dimension_numbers<[1], [0], [0], [1], [0, 0, 1, 1], [], []>} : vector<128x128xf32>, vector<128x128xf32>, vector<128x128xf32> -> vector<128x128xf32>
    %c0_21 = arith.constant 0 : index
    %c0_22 = arith.constant 0 : index
    %24 = vector.load %arg9[%c0_21, %c0_22] : memref<1x128xf32, #tpu.memory_space<vmem>>, vector<1x128xf32>
    %25 = vector.broadcast %24 : vector<1x128xf32> to vector<128x128xf32>
    %26 = arith.addf %23, %25 : vector<128x128xf32>
    %c0_23 = arith.constant 0 : index
    %c0_24 = arith.constant 0 : index
    %27 = vector.load %arg10[%c0_23, %c0_24] : memref<128x128xf32, #tpu.memory_space<vmem>>, vector<128x128xf32>
    tpu.vector_store %arg10[%c0_23, %c0_24], %26 {strides = array<i32>} : memref<128x128xf32, #tpu.memory_space<vmem>>, vector<128x128xf32>,
    return
  }
  func.func @transform_0(%arg0: i32) -> (i32, i32) {
    %c0_i32 = arith.constant 0 : i32
    %c0_i32_0 = arith.constant 0 : i32
    return %arg0, %c0_i32 : i32, i32
  }
  func.func @transform_1(%arg0: i32) -> (i32, i32) {
    %c0_i32 = arith.constant 0 : i32
    %c0_i32_0 = arith.constant 0 : i32
    %c0_i32_1 = arith.constant 0 : i32
    return %c0_i32, %c0_i32_0 : i32, i32
  }
  func.func @transform_2(%arg0: i32) -> (i32, i32) {
    %c0_i32 = arith.constant 0 : i32
    %c0_i32_0 = arith.constant 0 : i32
    %c0_i32_1 = arith.constant 0 : i32
    return %c0_i32, %c0_i32_0 : i32, i32
  }
  func.func @transform_3(%arg0: i32) -> (i32, i32) {
    %c0_i32 = arith.constant 0 : i32
    %c0_i32_0 = arith.constant 0 : i32
    %c0_i32_1 = arith.constant 0 : i32
    return %c0_i32, %c0_i32_0 : i32, i32
  }
  func.func @transform_4(%arg0: i32) -> (i32, i32) {
    %c0_i32 = arith.constant 0 : i32
    %c0_i32_0 = arith.constant 0 : i32
    %c0_i32_1 = arith.constant 0 : i32
    return %c0_i32, %c0_i32_0 : i32, i32
  }
  func.func @transform_5(%arg0: i32) -> (i32, i32) {
    %c0_i32 = arith.constant 0 : i32
    %c0_i32_0 = arith.constant 0 : i32
    %c0_i32_1 = arith.constant 0 : i32
    return %c0_i32, %c0_i32_0 : i32, i32
  }
  func.func @transform_6(%arg0: i32) -> (i32, i32) {
    %c0_i32 = arith.constant 0 : i32
    %c0_i32_0 = arith.constant 0 : i32
    %c0_i32_1 = arith.constant 0 : i32
    return %c0_i32, %c0_i32_0 : i32, i32
  }
  func.func @transform_7(%arg0: i32) -> (i32, i32) {
    %c0_i32 = arith.constant 0 : i32
    %c0_i32_0 = arith.constant 0 : i32
    %c0_i32_1 = arith.constant 0 : i32
    return %c0_i32, %c0_i32_0 : i32, i32
  }
  func.func @transform_8(%arg0: i32) -> (i32, i32) {
    %c0_i32 = arith.constant 0 : i32
    %c0_i32_0 = arith.constant 0 : i32
    %c0_i32_1 = arith.constant 0 : i32
    return %c0_i32, %c0_i32_0 : i32, i32
  }
  func.func @transform_9(%arg0: i32) -> (i32, i32) {
    %c0_i32 = arith.constant 0 : i32
    %c0_i32_0 = arith.constant 0 : i32
    return %arg0, %c0_i32 : i32, i32
  }
}

</mosaic_0001>

<bundles_post_ra>
// kernel: tpu_custom_call.1
= control target key start
LH: loop header
LB: loop body
LE: loop exit
PB: predicated region body
PF: predicated region fallthrough
CT: control target
= control target key end

     0   :  { %14 = vsyncpa [#allocation3], 0  ;;  %s1678_s0 = inlined_call_operand.hbm [shape: f32[128,128], index: 0, kind: input, shape index: {}]   ;;  %s1679_s1 = inlined_call_operand.hbm [shape: f32[128,128], index: 1, kind: input, shape index: {}]   ;;  %s1680_s2 = inlined_call_operand.vmem [shape: f32[1,128], index: 2, kind: input, shape index: {}]   ;;  %s1681_s3 = inlined_call_operand.hbm [shape: f32[128,128], index: 3, kind: input, shape index: {}]   ;;  %s1682_s4 = inlined_call_operand.vmem [shape: f32[1,128], index: 4, kind: input, shape index: {}]   ;;  %s1683_s5 = inlined_call_operand.hbm [shape: f32[128,128], index: 5, kind: input, shape index: {}]   ;;  %s1684_s6 = inlined_call_operand.vmem [shape: f32[1,128], index: 6, kind: input, shape index: {}]   ;;  %s1685_s7 = inlined_call_operand.hbm [shape: f32[128,128], index: 7, kind: input, shape index: {}]   ;;  %s1686_s8 = inlined_call_operand.vmem [shape: f32[1,128], index: 8, kind: input, shape index: {}]   ;;  %s1687_s9 = inlined_call_operand.hbm [shape: f32[128,128], index: 9, kind: output, shape index: {}]  }
   0x1   :  { %15 = vsyncpa [#allocation6], 0 }
   0x2   :  { %16 = vsyncpa [#allocation9], 0 }
   0x3   :  { %17 = vsyncpa [#allocation4], 0  ;;  %s1504_s30 = smov [#allocation5]   ;;  %s1505_s11 = smov [#allocation8]  }
   0x4   :  { %s35_s10 = sshll.u32 %s1504_s30, 4  ;;  %s63_s12 = sshll.u32 %s1505_s11, 4  ;;  %s36_s10 = int_to_ptr.vmem [resolvable:$true] %s35_s10  ;;  %s1562_s12 = int_to_ptr.vmem [resolvable:$true] %s63_s12 }
   0x5   :  { %s1364_s15 = scalar_lea.hbm %s1679_s1, 2048 }
   0x6   :  { %p1365_p0 = scmp.ne.s32.totalorder %s1679_s1, %s1364_s15  ;;  %p1368_p1 = scmp.lt.u32.totalorder %s1364_s15, %s1679_s1 }
   0x8   :  { %p1370_p2 = pnand %p1368_p1, %p1365_p0 }
   0xa   :  { %1373 = shalt.err (!%p1370_p2)
}
   0xb   :  { %s1374_s20 = scalar_lea.vmem %s36_s10, 2048  ;;  %p1379_p4 = scmp.lt.s32.totalorder %s36_s10, %s36_s10 }
   0xc   :  { %p1375_p3 = scmp.ne.s32.totalorder %s36_s10, %s1374_s20  ;;  %p1380_p5 = scmp.lt.s32.totalorder %s1374_s20, %s1374_s20 }
   0xe   :  { %p1381_p6 = por %p1380_p5, %p1379_p4 }
  0x10   :  { %p1382_p7 = pnand %p1381_p6, %p1375_p3 }
  0x12   :  { %1385 = shalt.err (!%p1382_p7)
}
  0x13   :  { %s1506_s21 = smov 128   ;;  %s1507_s22 = smov 8  }
  0x14   :  { %41 = dma.hbm_to_vmem [thread:$0]  %s1679_s1, 2048, %s36_s10, [#allocation6], %s1506_s21, %s1506_s21, %s1507_s22  }
  0x15   :  { %s1386_s27 = scalar_lea.hbm %s1683_s5, 2048 }
  0x16   :  { %p1387_p8 = scmp.ne.s32.totalorder %s1683_s5, %s1386_s27  ;;  %p1390_p9 = scmp.lt.u32.totalorder %s1386_s27, %s1683_s5 }
  0x18   :  { %p1392_p10 = pnand %p1390_p9, %p1387_p8 }
  0x1a   :  { %1395 = shalt.err (!%p1392_p10)
}
  0x1b   :  { %s1396_s13 = scalar_lea.vmem %s1562_s12, 2048  ;;  %p1401_p12 = scmp.lt.s32.totalorder %s1562_s12, %s1562_s12 }
  0x1c   :  { %p1397_p11 = scmp.ne.s32.totalorder %s1562_s12, %s1396_s13  ;;  %p1402_p13 = scmp.lt.s32.totalorder %s1396_s13, %s1396_s13 }
  0x1e   :  { %p1403_p0 = por %p1402_p13, %p1401_p12 }
  0x20   :  { %p1404_p1 = pnand %p1403_p0, %p1397_p11 }
  0x22   :  { %1407 = shalt.err (!%p1404_p1)
}
  0x23   :  { %69 = dma.hbm_to_vmem [thread:$0]  %s1683_s5, 2048, %s1562_s12, [#allocation9], %s1506_s21, %s1506_s21, %s1507_s22  }
  0x24   :  { %s1508_s14 = smov [#allocation2]   ;;  %s1509_s16 = smov [#allocation7]  }
  0x25   :  { %s23_s15 = sshll.u32 %s1508_s14, 4  ;;  %s49_s17 = sshll.u32 %s1509_s16, 4  ;;  %s24_s15 = int_to_ptr.vmem [resolvable:$true] %s23_s15  ;;  %s1599_s17 = int_to_ptr.vmem [resolvable:$true] %s49_s17 }
  0x26   :  { %s1408_s20 = scalar_lea.hbm %s1678_s0, 2048 }
  0x27   :  { %p1409_p2 = scmp.ne.s32.totalorder %s1678_s0, %s1408_s20  ;;  %p1412_p3 = scmp.lt.u32.totalorder %s1408_s20, %s1678_s0 }
  0x29   :  { %p1414_p4 = pnand %p1412_p3, %p1409_p2 }
  0x2b   :  { %1417 = shalt.err (!%p1414_p4)
}
  0x2c   :  { %s1418_s5 = scalar_lea.vmem %s24_s15, 2048  ;;  %p1423_p6 = scmp.lt.s32.totalorder %s24_s15, %s24_s15 }
  0x2d   :  { %p1419_p5 = scmp.ne.s32.totalorder %s24_s15, %s1418_s5  ;;  %p1424_p7 = scmp.lt.s32.totalorder %s1418_s5, %s1418_s5 }
  0x2f   :  { %p1425_p8 = por %p1424_p7, %p1423_p6 }
  0x31   :  { %p1426_p9 = pnand %p1425_p8, %p1419_p5 }
  0x33   :  { %1429 = shalt.err (!%p1426_p9)
}
  0x34   :  { %29 = dma.hbm_to_vmem [thread:$0]  %s1678_s0, 2048, %s24_s15, [#allocation3], %s1506_s21, %s1506_s21, %s1507_s22  }
  0x35   :  { %s1430_s30 = scalar_lea.hbm %s1681_s3, 2048 }
  0x36   :  { %p1431_p10 = scmp.ne.s32.totalorder %s1681_s3, %s1430_s30  ;;  %p1434_p11 = scmp.lt.u32.totalorder %s1430_s30, %s1681_s3 }
  0x38   :  { %p1436_p12 = pnand %p1434_p11, %p1431_p10 }
  0x3a   :  { %1439 = shalt.err (!%p1436_p12)
}
  0x3b   :  { %s1440_s14 = scalar_lea.vmem %s1599_s17, 2048  ;;  %p1445_p0 = scmp.lt.s32.totalorder %s1599_s17, %s1599_s17 }
  0x3c   :  { %p1441_p13 = scmp.ne.s32.totalorder %s1599_s17, %s1440_s14  ;;  %p1446_p1 = scmp.lt.s32.totalorder %s1440_s14, %s1440_s14 }
  0x3e   :  { %p1447_p2 = por %p1446_p1, %p1445_p0 }
  0x40   :  { %p1448_p3 = pnand %p1447_p2, %p1441_p13 }
  0x42   :  { %1451 = shalt.err (!%p1448_p3)
}
  0x43   :  { %55 = dma.hbm_to_vmem [thread:$0]  %s1681_s3, 2048, %s1599_s17, [#allocation6], %s1506_s21, %s1506_s21, %s1507_s22  }
  0x44   :  { %s1510_s16 = smov [#allocation10]   ;;  %s1452_s23 = scalar_lea.hbm %s1685_s7, 2048 }
  0x45   :  { %s77_s18 = sshll.u32 %s1510_s16, 4  ;;  %p1453_p4 = scmp.ne.s32.totalorder %s1685_s7, %s1452_s23  ;;  %s78_s18 = int_to_ptr.vmem [resolvable:$true] %s77_s18 }
  0x46   :  { %p1456_p5 = scmp.lt.u32.totalorder %s1452_s23, %s1685_s7 }
  0x48   :  { %p1458_p6 = pnand %p1456_p5, %p1453_p4 }
  0x4a   :  { %1461 = shalt.err (!%p1458_p6)
}
  0x4b   :  { %s1462_s12 = scalar_lea.vmem %s78_s18, 2048  ;;  %p1467_p8 = scmp.lt.s32.totalorder %s78_s18, %s78_s18 }
  0x4c   :  { %p1463_p7 = scmp.ne.s32.totalorder %s78_s18, %s1462_s12  ;;  %p1468_p9 = scmp.lt.s32.totalorder %s1462_s12, %s1462_s12 }
  0x4e   :  { %p1469_p10 = por %p1468_p9, %p1467_p8 }
  0x50   :  { %p1470_p11 = pnand %p1469_p10, %p1463_p7 }
  0x52   :  { %1473 = shalt.err (!%p1470_p11)
}
  0x53   :  { %83 = dma.hbm_to_vmem [thread:$0]  %s1685_s7, 2048, %s78_s18, [#allocation9], %s1506_s21, %s1506_s21, %s1507_s22  }
  0x54   :  { %1496 = dma.done.wait [#allocation3], 2048  }
  0x55   :  { %1497 = vsyncadd [#allocation3], 4294965248 }
  0x56   :  { %1498 = dma.done.wait [#allocation6], 4096  }
  0x57   :  { %1499 = vsyncadd [#allocation6], 4294963200 }
  0x58   :  { %1500 = dma.done.wait [#allocation9], 4096  }
  0x59   :  { %1501 = vsyncadd [#allocation9], 4294963200  ;;  %v117_v0 = vld [vmem:[#allocation5] sm:$0xff]  ;;  %v118_v1 = vld [vmem:[#allocation5 + $0x8] sm:$0xff] }
  0x5a   :  { %v119_v2 = vld [vmem:[#allocation5 + $0x10] sm:$0xff]  ;;  %v1228_v3 = vpack.c.bf16 %v118_v1, %v117_v0  ;;  %v120_v4 = vld [vmem:[#allocation5 + $0x18] sm:$0xff]  ;;  %v121_v6 = vld [vmem:[#allocation5 + $0x20] sm:$0xff] }
  0x5b   :  { %v1232_v5 = vpack.c.bf16 %v120_v4, %v119_v2  ;;  %v122_v7 = vld [vmem:[#allocation5 + $0x28] sm:$0xff]  ;;  %v101_v9 = vld [vmem:[#allocation2] sm:$0xff]  ;;  %v123_v10 = vld [vmem:[#allocation5 + $0x30] sm:$0xff] }
  0x5c   :  { %1229 = vmatprep.subr.bf16.mxu0 %v1228_v3  ;;  %v1236_v8 = vpack.c.bf16 %v122_v7, %v121_v6  ;;  %v124_v11 = vld [vmem:[#allocation5 + $0x38] sm:$0xff]  ;;  %1036 = vmatprep.mubr.f32.mxu0 %v101_v9  ;;  %v125_v13 = vld [vmem:[#allocation5 + $0x40] sm:$0xff]  ;;  %v126_v14 = vld [vmem:[#allocation5 + $0x48] sm:$0xff] }
  0x5d   :  { %1231 = vmatpush3.bf16.msra.mxu0 %v1228_v3  ;;  %v1240_v12 = vpack.c.bf16 %v124_v11, %v123_v10  ;;  %v301_v15 = vld [vmem:[#allocation7] sm:$0xff]  ;;  %v302_v16 = vld [vmem:[#allocation7 + $0x8] sm:$0xff]  ;;  %v303_v17 = vld [vmem:[#allocation7 + $0x10] sm:$0xff]  ;;  %v1244_v21 = vpack.c.bf16 %v126_v14, %v125_v13 }
  0x5e   :  { %1233 = vmatprep.subr.bf16.mxu0 %v1232_v5  ;;  %v304_v18 = vld [vmem:[#allocation7 + $0x18] sm:$0xff]  ;;  %v1260_v19 = vpack.c.bf16 %v302_v16, %v301_v15  ;;  %v305_v22 = vld [vmem:[#allocation7 + $0x20] sm:$0xff]  ;;  %v306_v23 = vld [vmem:[#allocation7 + $0x28] sm:$0xff] }
  0x5f   :  { %v1264_v20 = vpack.c.bf16 %v304_v18, %v303_v17  ;;  %v127_v24 = vld [vmem:[#allocation5 + $0x50] sm:$0xff]  ;;  %v128_v25 = vld [vmem:[#allocation5 + $0x58] sm:$0xff]  ;;  %v1268_v26 = vpack.c.bf16 %v306_v23, %v305_v22  ;;  %v129_v30 = vld [vmem:[#allocation5 + $0x60] sm:$0xff] }
  0x60   :  { %1261 = vmatprep.subr.bf16.mxu1 %v1260_v19  ;;  %v1248_v27 = vpack.c.bf16 %v128_v25, %v127_v24  ;;  %v307_v28 = vld [vmem:[#allocation7 + $0x30] sm:$0xff]  ;;  %v308_v29 = vld [vmem:[#allocation7 + $0x38] sm:$0xff]  ;;  %v130_v31 = vld [vmem:[#allocation5 + $0x68] sm:$0xff] }
  0x61   :  { %1235 = vmatpush3.bf16.msra.mxu0 %v1232_v5  ;;  %1263 = vmatpush3.bf16.msra.mxu1 %v1260_v19  ;;  %v1272_v32 = vpack.c.bf16 %v308_v29, %v307_v28  ;;  %v1252_v33 = vpack.c.bf16 %v130_v31, %v129_v30  ;;  %v309_v34 = vld [vmem:[#allocation7 + $0x40] sm:$0xff]  ;;  %v310_v35 = vld [vmem:[#allocation7 + $0x48] sm:$0xff]  ;;  %v131_v36 = vld [vmem:[#allocation5 + $0x70] sm:$0xff] }
  0x62   :  { %1237 = vmatprep.subr.bf16.mxu0 %v1236_v8  ;;  %1265 = vmatprep.subr.bf16.mxu1 %v1264_v20  ;;  %v132_v37 = vld [vmem:[#allocation5 + $0x78] sm:$0xff]  ;;  %v1276_v38 = vpack.c.bf16 %v310_v35, %v309_v34  ;;  %v311_v40 = vld [vmem:[#allocation7 + $0x50] sm:$0xff]  ;;  %v313_v43 = vld [vmem:[#allocation7 + $0x60] sm:$0xff] }
  0x63   :  { %v1256_v39 = vpack.c.bf16 %v132_v37, %v131_v36  ;;  %v312_v41 = vld [vmem:[#allocation7 + $0x58] sm:$0xff]  ;;  %v314_v44 = vld [vmem:[#allocation7 + $0x68] sm:$0xff]  ;;  %v103_v47 = vld [vmem:[#allocation2 + $0x10] sm:$0xff] }
  0x64   :  { %v1280_v42 = vpack.c.bf16 %v312_v41, %v311_v40  ;;  %v102_v45 = vld [vmem:[#allocation2 + $0x8] sm:$0xff]  ;;  %v1284_v46 = vpack.c.bf16 %v314_v44, %v313_v43  ;;  %v104_v48 = vld [vmem:[#allocation2 + $0x18] sm:$0xff]  ;;  %v105_v49 = vld [vmem:[#allocation2 + $0x20] sm:$0xff] }
  0x65   :  { %1239 = vmatpush3.bf16.msra.mxu0 %v1236_v8  ;;  %1267 = vmatpush3.bf16.msra.mxu1 %v1264_v20  ;;  %v106_v50 = vld [vmem:[#allocation2 + $0x28] sm:$0xff]  ;;  %v107_v51 = vld [vmem:[#allocation2 + $0x30] sm:$0xff]  ;;  %v108_v52 = vld [vmem:[#allocation2 + $0x38] sm:$0xff] }
  0x66   :  { %1241 = vmatprep.subr.bf16.mxu0 %v1240_v12  ;;  %1269 = vmatprep.subr.bf16.mxu1 %v1268_v26  ;;  %v109_v53 = vld [vmem:[#allocation2 + $0x40] sm:$0xff]  ;;  %v110_v54 = vld [vmem:[#allocation2 + $0x48] sm:$0xff]  ;;  %v111_v55 = vld [vmem:[#allocation2 + $0x50] sm:$0xff] }
  0x67   :  { %v112_v56 = vld [vmem:[#allocation2 + $0x58] sm:$0xff]  ;;  %v113_v57 = vld [vmem:[#allocation2 + $0x60] sm:$0xff]  ;;  %v114_v58 = vld [vmem:[#allocation2 + $0x68] sm:$0xff] }
  0x68   :  { %v115_v59 = vld [vmem:[#allocation2 + $0x70] sm:$0xff]  ;;  %v116_v60 = vld [vmem:[#allocation2 + $0x78] sm:$0xff]  ;;  %v485_v0 = vld [vmem:[#allocation8] sm:$0xff] }
  0x69   :  { %1243 = vmatpush3.bf16.msra.mxu0 %v1240_v12  ;;  %1271 = vmatpush3.bf16.msra.mxu1 %v1268_v26  ;;  %v315_v61 = vld [vmem:[#allocation7 + $0x70] sm:$0xff]  ;;  %v316_v62 = vld [vmem:[#allocation7 + $0x78] sm:$0xff]  ;;  %v486_v1 = vld [vmem:[#allocation8 + $0x8] sm:$0xff] }
  0x6a   :  { %1245 = vmatprep.subr.bf16.mxu0 %v1244_v21  ;;  %1273 = vmatprep.subr.bf16.mxu1 %v1272_v32  ;;  %v1288_v63 = vpack.c.bf16 %v316_v62, %v315_v61  ;;  %v487_v2 = vld [vmem:[#allocation8 + $0x10] sm:$0xff]  ;;  %v1292_v3 = vpack.c.bf16 %v486_v1, %v485_v0  ;;  %v488_v4 = vld [vmem:[#allocation8 + $0x18] sm:$0xff]  ;;  %v489_v6 = vld [vmem:[#allocation8 + $0x20] sm:$0xff] }
  0x6b   :  { %v1296_v5 = vpack.c.bf16 %v488_v4, %v487_v2  ;;  %v490_v7 = vld [vmem:[#allocation8 + $0x28] sm:$0xff]  ;;  %v491_v9 = vld [vmem:[#allocation8 + $0x30] sm:$0xff]  ;;  %v492_v10 = vld [vmem:[#allocation8 + $0x38] sm:$0xff] }
  0x6c   :  { %v1300_v8 = vpack.c.bf16 %v490_v7, %v489_v6  ;;  %v1304_v11 = vpack.c.bf16 %v492_v10, %v491_v9  ;;  %v493_v12 = vld [vmem:[#allocation8 + $0x40] sm:$0xff]  ;;  %v494_v13 = vld [vmem:[#allocation8 + $0x48] sm:$0xff]  ;;  %v495_v15 = vld [vmem:[#allocation8 + $0x50] sm:$0xff] }
  0x6d   :  { %1247 = vmatpush3.bf16.msra.mxu0 %v1244_v21  ;;  %1275 = vmatpush3.bf16.msra.mxu1 %v1272_v32  ;;  %v1308_v14 = vpack.c.bf16 %v494_v13, %v493_v12  ;;  %v496_v16 = vld [vmem:[#allocation8 + $0x58] sm:$0xff]  ;;  %v497_v18 = vld [vmem:[#allocation8 + $0x60] sm:$0xff]  ;;  %v498_v19 = vld [vmem:[#allocation8 + $0x68] sm:$0xff] }
  0x6e   :  { %1249 = vmatprep.subr.bf16.mxu0 %v1248_v27  ;;  %1277 = vmatprep.subr.bf16.mxu1 %v1276_v38  ;;  %v1312_v17 = vpack.c.bf16 %v496_v16, %v495_v15  ;;  %v1316_v20 = vpack.c.bf16 %v498_v19, %v497_v18  ;;  %v872_v21 = vld [vmem:[%s1680_s2] ss:$0 sm:$0xff]  ;;  %v499_v6 = vld [vmem:[#allocation8 + $0x70] sm:$0xff]  ;;  %v500_v7 = vld [vmem:[#allocation8 + $0x78] sm:$0xff] }
  0x6f   :  { %v669_v9 = vld [vmem:[#allocation10] sm:$0xff]  ;;  %v670_v10 = vld [vmem:[#allocation10 + $0x8] sm:$0xff]  ;;  %v672_v13 = vld [vmem:[#allocation10 + $0x18] sm:$0xff] }
  0x70   :  { %v1324_v12 = vpack.c.bf16 %v670_v10, %v669_v9  ;;  %v673_v15 = vld [vmem:[#allocation10 + $0x20] sm:$0xff]  ;;  %v674_v16 = vld [vmem:[#allocation10 + $0x28] sm:$0xff]  ;;  %v675_v18 = vld [vmem:[#allocation10 + $0x30] sm:$0xff] }
  0x71   :  { %1251 = vmatpush3.bf16.msra.mxu0 %v1248_v27  ;;  %1279 = vmatpush3.bf16.msra.mxu1 %v1276_v38  ;;  %v676_v19 = vld [vmem:[#allocation10 + $0x38] sm:$0xff] }
  0x72   :  { %1253 = vmatprep.subr.bf16.mxu0 %v1252_v33  ;;  %1281 = vmatprep.subr.bf16.mxu1 %v1280_v42 }
  0x75   :  { %1255 = vmatpush3.bf16.msra.mxu0 %v1252_v33  ;;  %1283 = vmatpush3.bf16.msra.mxu1 %v1280_v42 }
  0x76   :  { %1257 = vmatprep.subr.bf16.mxu0 %v1256_v39  ;;  %1285 = vmatprep.subr.bf16.mxu1 %v1284_v46 }
  0x79   :  { %1259 = vmatpush3.bf16.msra.mxu0 %v1256_v39  ;;  %1287 = vmatpush3.bf16.msra.mxu1 %v1284_v46 }
  0x7a   :  { %1289 = vmatprep.subr.bf16.mxu1 %v1288_v63  ;;  %1293 = vmatprep.subr.bf16.mxu0 %v1292_v3 }
  0x7c   :  { %1037 = vmatmul.mubr.f32.vlgmr.msra.gmra.mrb[0].mxu0 %v102_v45 }
  0x7d   :  { %1039 = vmatprep.mubr.f32.mxu0 %v103_v47  ;;  %1291 = vmatpush3.bf16.msra.mxu1 %v1288_v63 }
  0x7e   :  { %1295 = vmatpush3.bf16.msra.mxu0 %v1292_v3  ;;  %1325 = vmatprep.subr.bf16.mxu1 %v1324_v12 }
  0x7f   :  { %1297 = vmatprep.subr.bf16.mxu0 %v1296_v5 }
  0x80   :  { %1040 = vmatmul.mubr.f32.gmra.mrb[2].mxu0 %v104_v48 }
  0x81   :  { %1042 = vmatprep.mubr.f32.mxu0 %v105_v49 }
  0x82   :  { %1299 = vmatpush3.bf16.msra.mxu0 %v1296_v5 }
  0x83   :  { %1301 = vmatprep.subr.bf16.mxu0 %v1300_v8 }
  0x84   :  { %1043 = vmatmul.mubr.f32.gmra.mrb[4].mxu0 %v106_v50 }
  0x85   :  { %1045 = vmatprep.mubr.f32.mxu0 %v107_v51 }
  0x86   :  { %1303 = vmatpush3.bf16.msra.mxu0 %v1300_v8  ;;  %v1320_v8 = vpack.c.bf16 %v500_v7, %v499_v6 }
  0x87   :  { %1305 = vmatprep.subr.bf16.mxu0 %v1304_v11 }
  0x88   :  { %1046 = vmatmul.mubr.f32.gmra.mrb[6].mxu0 %v108_v52 }
  0x89   :  { %1048 = vmatprep.mubr.f32.mxu0 %v109_v53 }
  0x8a   :  { %1307 = vmatpush3.bf16.msra.mxu0 %v1304_v11  ;;  %v671_v11 = vld [vmem:[#allocation10 + $0x10] sm:$0xff] }
  0x8b   :  { %1309 = vmatprep.subr.bf16.mxu0 %v1308_v14 }
  0x8c   :  { %1049 = vmatmul.mubr.f32.gmra.mrb[8].mxu0 %v110_v54 }
  0x8d   :  { %1051 = vmatprep.mubr.f32.mxu0 %v111_v55 }
  0x8e   :  { %1311 = vmatpush3.bf16.msra.mxu0 %v1308_v14  ;;  %v1328_v14 = vpack.c.bf16 %v672_v13, %v671_v11 }
  0x8f   :  { %1313 = vmatprep.subr.bf16.mxu0 %v1312_v17 }
  0x90   :  { %1052 = vmatmul.mubr.f32.gmra.mrb[10].mxu0 %v112_v56 }
  0x91   :  { %1054 = vmatprep.mubr.f32.mxu0 %v113_v57 }
  0x92   :  { %1315 = vmatpush3.bf16.msra.mxu0 %v1312_v17  ;;  %v1332_v17 = vpack.c.bf16 %v674_v16, %v673_v15  ;;  %v683_v15 = vld [vmem:[#allocation10 + $0x70] sm:$0xff]  ;;  %v684_v16 = vld [vmem:[#allocation10 + $0x78] sm:$0xff] }
  0x93   :  { %1317 = vmatprep.subr.bf16.mxu0 %v1316_v20 }
  0x94   :  { %1055 = vmatmul.mubr.f32.gmra.mrb[12].mxu0 %v114_v58 }
  0x95   :  { %1057 = vmatprep.mubr.f32.mxu0 %v115_v59 }
  0x96   :  { %1319 = vmatpush3.bf16.msra.mxu0 %v1316_v20  ;;  %v1336_v20 = vpack.c.bf16 %v676_v19, %v675_v18  ;;  %v874_v18 = vld [vmem:[%s1684_s6] ss:$0 sm:$0xff] }
  0x97   :  { %1321 = vmatprep.subr.bf16.mxu0 %v1320_v8 }
  0x98   :  { %1058 = vmatmul.mubr.f32.gmra.mrb[14].mxu0 %v116_v60 }
  0x9a   :  { %1323 = vmatpush3.bf16.msra.mxu0 %v1320_v8 }
 0x14f   :  { %v1038_v22 = vpop.f32.mrb[0].mxu0 }
 0x150   :  { %v212_v23 = vadd.f32 %v1038_v22, %v872_v21  ;;  %v206_v24 = vpop.f32.mrb[1].mxu0  ;;  %v678_v22 = vld [vmem:[#allocation10 + $0x48] sm:$0xff] }
 0x151   :  { %v207_v25 = vadd.f32 %v872_v21, %v206_v24  ;;  %v679_v24 = vld [vmem:[#allocation10 + $0x50] sm:$0xff] }
 0x152   :  { %v286_v28 = vmax.f32 %v212_v23, 0.0 }
 0x153   :  { %v1041_v26 = vpop.f32.mrb[2].mxu0  ;;  %v285_v27 = vmax.f32 %v207_v25, 0.0  ;;  %v680_v25 = vld [vmem:[#allocation10 + $0x58] sm:$0xff] }
 0x154   :  { %v222_v29 = vadd.f32 %v1041_v26, %v872_v21  ;;  %v216_v30 = vpop.f32.mrb[3].mxu0  ;;  %v1344_v26 = vpack.c.bf16 %v680_v25, %v679_v24 }
 0x155   :  { %v217_v31 = vadd.f32 %v872_v21, %v216_v30  ;;  %1092 = vmatprep.mubr.f32.mxu1 %v285_v27  ;;  %v681_v27 = vld [vmem:[#allocation10 + $0x60] sm:$0xff] }
 0x156   :  { %1093 = vmatmul.mubr.f32.vlgmr.msra.gmra.mrb[0].mxu1 %v286_v28  ;;  %v288_v34 = vmax.f32 %v222_v29, 0.0  ;;  %v682_v28 = vld [vmem:[#allocation10 + $0x68] sm:$0xff]  ;;  %v873_v30 = vld [vmem:[%s1682_s4] ss:$0 sm:$0xff] }
 0x157   :  { %v287_v32 = vmax.f32 %v217_v31, 0.0  ;;  %v1044_v33 = vpop.f32.mrb[4].mxu0  ;;  %1327 = vmatpush3.bf16.msra.mxu1 %v1324_v12  ;;  %v1348_v29 = vpack.c.bf16 %v682_v28, %v681_v27 }
 0x158   :  { %v232_v35 = vadd.f32 %v1044_v33, %v872_v21  ;;  %v226_v36 = vpop.f32.mrb[5].mxu0  ;;  %1329 = vmatprep.subr.bf16.mxu1 %v1328_v14 }
 0x159   :  { %v227_v37 = vadd.f32 %v872_v21, %v226_v36  ;;  %1095 = vmatprep.mubr.f32.mxu1 %v287_v32 }
 0x15a   :  { %1096 = vmatmul.mubr.f32.gmra.mrb[2].mxu1 %v288_v34  ;;  %v290_v40 = vmax.f32 %v232_v35, 0.0 }
 0x15b   :  { %v289_v38 = vmax.f32 %v227_v37, 0.0  ;;  %v1047_v39 = vpop.f32.mrb[6].mxu0  ;;  %1331 = vmatpush3.bf16.msra.mxu1 %v1328_v14 }
 0x15c   :  { %v242_v41 = vadd.f32 %v1047_v39, %v872_v21  ;;  %v236_v42 = vpop.f32.mrb[7].mxu0  ;;  %1333 = vmatprep.subr.bf16.mxu1 %v1332_v17 }
 0x15d   :  { %v237_v43 = vadd.f32 %v872_v21, %v236_v42  ;;  %1098 = vmatprep.mubr.f32.mxu1 %v289_v38 }
 0x15e   :  { %1099 = vmatmul.mubr.f32.gmra.mrb[4].mxu1 %v290_v40  ;;  %v292_v46 = vmax.f32 %v242_v41, 0.0 }
 0x15f   :  { %v291_v44 = vmax.f32 %v237_v43, 0.0  ;;  %v1050_v45 = vpop.f32.mrb[8].mxu0  ;;  %1335 = vmatpush3.bf16.msra.mxu1 %v1332_v17  ;;  %v1352_v17 = vpack.c.bf16 %v684_v16, %v683_v15 }
 0x160   :  { %v252_v47 = vadd.f32 %v1050_v45, %v872_v21  ;;  %v246_v48 = vpop.f32.mrb[9].mxu0  ;;  %1337 = vmatprep.subr.bf16.mxu1 %v1336_v20 }
 0x161   :  { %v247_v49 = vadd.f32 %v872_v21, %v246_v48  ;;  %1101 = vmatprep.mubr.f32.mxu1 %v291_v44 }
 0x162   :  { %1102 = vmatmul.mubr.f32.gmra.mrb[6].mxu1 %v292_v46  ;;  %v294_v52 = vmax.f32 %v252_v47, 0.0 }
 0x163   :  { %v293_v50 = vmax.f32 %v247_v49, 0.0  ;;  %v1053_v51 = vpop.f32.mrb[10].mxu0  ;;  %1339 = vmatpush3.bf16.msra.mxu1 %v1336_v20 }
 0x164   :  { %v262_v53 = vadd.f32 %v1053_v51, %v872_v21  ;;  %v256_v54 = vpop.f32.mrb[11].mxu0 }
 0x165   :  { %v257_v55 = vadd.f32 %v872_v21, %v256_v54  ;;  %1104 = vmatprep.mubr.f32.mxu1 %v293_v50 }
 0x166   :  { %1105 = vmatmul.mubr.f32.gmra.mrb[8].mxu1 %v294_v52  ;;  %v296_v58 = vmax.f32 %v262_v53, 0.0 }
 0x167   :  { %v295_v56 = vmax.f32 %v257_v55, 0.0  ;;  %v1056_v57 = vpop.f32.mrb[12].mxu0 }
 0x168   :  { %v272_v59 = vadd.f32 %v1056_v57, %v872_v21  ;;  %v266_v60 = vpop.f32.mrb[13].mxu0 }
 0x169   :  { %v267_v61 = vadd.f32 %v872_v21, %v266_v60  ;;  %1107 = vmatprep.mubr.f32.mxu1 %v295_v56 }
 0x16a   :  { %1108 = vmatmul.mubr.f32.gmra.mrb[10].mxu1 %v296_v58  ;;  %v298_v0 = vmax.f32 %v272_v59, 0.0 }
 0x16b   :  { %v297_v62 = vmax.f32 %v267_v61, 0.0  ;;  %v1059_v63 = vpop.f32.mrb[14].mxu0 }
 0x16c   :  { %v282_v1 = vadd.f32 %v1059_v63, %v872_v21  ;;  %v276_v2 = vpop.f32.mrb[15].mxu0 }
 0x16d   :  { %v277_v3 = vadd.f32 %v872_v21, %v276_v2  ;;  %1110 = vmatprep.mubr.f32.mxu1 %v297_v62  ;;  %v677_v21 = vld [vmem:[#allocation10 + $0x40] sm:$0xff] }
 0x16e   :  { %1111 = vmatmul.mubr.f32.gmra.mrb[12].mxu1 %v298_v0  ;;  %v300_v5 = vmax.f32 %v282_v1, 0.0  ;;  %v1340_v23 = vpack.c.bf16 %v678_v22, %v677_v21 }
 0x16f   :  { %v299_v4 = vmax.f32 %v277_v3, 0.0 }
 0x170   :  { %1341 = vmatprep.subr.bf16.mxu1 %v1340_v23 }
 0x171   :  { %1113 = vmatprep.mubr.f32.mxu1 %v299_v4  ;;  %1343 = vmatpush3.bf16.msra.mxu1 %v1340_v23 }
 0x172   :  { %1114 = vmatmul.mubr.f32.gmra.mrb[14].mxu1 %v300_v5  ;;  %1345 = vmatprep.subr.bf16.mxu1 %v1344_v26 }
 0x175   :  { %1347 = vmatpush3.bf16.msra.mxu1 %v1344_v26 }
 0x176   :  { %1349 = vmatprep.subr.bf16.mxu1 %v1348_v29 }
 0x179   :  { %1351 = vmatpush3.bf16.msra.mxu1 %v1348_v29 }
 0x17a   :  { %1353 = vmatprep.subr.bf16.mxu1 %v1352_v17 }
 0x17d   :  { %1355 = vmatpush3.bf16.msra.mxu1 %v1352_v17 }
 0x229   :  { %v1094_v31 = vpop.f32.mrb[0].mxu1 }
 0x22a   :  { %v396_v32 = vadd.f32 %v1094_v31, %v873_v30  ;;  %v390_v33 = vpop.f32.mrb[1].mxu1 }
 0x22b   :  { %v391_v34 = vadd.f32 %v873_v30, %v390_v33 }
 0x22c   :  { %v470_v37 = vmax.f32 %v396_v32, 0.0 }
 0x22d   :  { %v469_v35 = vmax.f32 %v391_v34, 0.0  ;;  %v1097_v36 = vpop.f32.mrb[2].mxu1 }
 0x22e   :  { %v406_v38 = vadd.f32 %v1097_v36, %v873_v30  ;;  %v400_v39 = vpop.f32.mrb[3].mxu1 }
 0x22f   :  { %v401_v40 = vadd.f32 %v873_v30, %v400_v39  ;;  %1148 = vmatprep.mubr.f32.mxu0 %v469_v35 }
 0x230   :  { %1149 = vmatmul.mubr.f32.vlgmr.msra.gmra.mrb[16].mxu0 %v470_v37  ;;  %v472_v43 = vmax.f32 %v406_v38, 0.0 }
 0x231   :  { %v471_v41 = vmax.f32 %v401_v40, 0.0  ;;  %v1100_v42 = vpop.f32.mrb[4].mxu1 }
 0x232   :  { %v416_v44 = vadd.f32 %v1100_v42, %v873_v30  ;;  %v410_v45 = vpop.f32.mrb[5].mxu1 }
 0x233   :  { %v411_v46 = vadd.f32 %v873_v30, %v410_v45  ;;  %1151 = vmatprep.mubr.f32.mxu0 %v471_v41 }
 0x234   :  { %1152 = vmatmul.mubr.f32.gmra.mrb[18].mxu0 %v472_v43  ;;  %v474_v49 = vmax.f32 %v416_v44, 0.0 }
 0x235   :  { %v473_v47 = vmax.f32 %v411_v46, 0.0  ;;  %v1103_v48 = vpop.f32.mrb[6].mxu1 }
 0x236   :  { %v426_v50 = vadd.f32 %v1103_v48, %v873_v30  ;;  %v420_v51 = vpop.f32.mrb[7].mxu1 }
 0x237   :  { %v421_v52 = vadd.f32 %v873_v30, %v420_v51  ;;  %1154 = vmatprep.mubr.f32.mxu0 %v473_v47 }
 0x238   :  { %1155 = vmatmul.mubr.f32.gmra.mrb[20].mxu0 %v474_v49  ;;  %v476_v55 = vmax.f32 %v426_v50, 0.0 }
 0x239   :  { %v475_v53 = vmax.f32 %v421_v52, 0.0  ;;  %v1106_v54 = vpop.f32.mrb[8].mxu1 }
 0x23a   :  { %v436_v56 = vadd.f32 %v1106_v54, %v873_v30  ;;  %v430_v57 = vpop.f32.mrb[9].mxu1 }
 0x23b   :  { %v431_v58 = vadd.f32 %v873_v30, %v430_v57  ;;  %1157 = vmatprep.mubr.f32.mxu0 %v475_v53 }
 0x23c   :  { %1158 = vmatmul.mubr.f32.gmra.mrb[22].mxu0 %v476_v55  ;;  %v478_v61 = vmax.f32 %v436_v56, 0.0 }
 0x23d   :  { %v477_v59 = vmax.f32 %v431_v58, 0.0  ;;  %v1109_v60 = vpop.f32.mrb[10].mxu1 }
 0x23e   :  { %v446_v62 = vadd.f32 %v1109_v60, %v873_v30  ;;  %v440_v63 = vpop.f32.mrb[11].mxu1 }
 0x23f   :  { %v441_v0 = vadd.f32 %v873_v30, %v440_v63  ;;  %1160 = vmatprep.mubr.f32.mxu0 %v477_v59 }
 0x240   :  { %1161 = vmatmul.mubr.f32.gmra.mrb[24].mxu0 %v478_v61  ;;  %v480_v3 = vmax.f32 %v446_v62, 0.0 }
 0x241   :  { %v479_v1 = vmax.f32 %v441_v0, 0.0  ;;  %v1112_v2 = vpop.f32.mrb[12].mxu1 }
 0x242   :  { %v456_v4 = vadd.f32 %v1112_v2, %v873_v30  ;;  %v450_v5 = vpop.f32.mrb[13].mxu1 }
 0x243   :  { %v451_v6 = vadd.f32 %v873_v30, %v450_v5  ;;  %1163 = vmatprep.mubr.f32.mxu0 %v479_v1 }
 0x244   :  { %1164 = vmatmul.mubr.f32.gmra.mrb[26].mxu0 %v480_v3  ;;  %v482_v9 = vmax.f32 %v456_v4, 0.0  ;;  %v875_v3 = vld [vmem:[%s1686_s8] ss:$0 sm:$0xff]  ;;  %s1511_s8 = smov [#allocation11]  }
 0x245   :  { %v481_v7 = vmax.f32 %v451_v6, 0.0  ;;  %v1115_v8 = vpop.f32.mrb[14].mxu1  ;;  %s858_s11 = sshll.u32 %s1511_s8, 4  ;;  %s859_s11 = int_to_ptr.vmem [resolvable:$true] %s858_s11 }
 0x246   :  { %v466_v10 = vadd.f32 %v1115_v8, %v873_v30  ;;  %v460_v11 = vpop.f32.mrb[15].mxu1  ;;  %s1474_s13 = scalar_lea.vmem %s859_s11, 2048  ;;  %p1479_p13 = scmp.lt.s32.totalorder %s859_s11, %s859_s11 }
 0x247   :  { %v461_v12 = vadd.f32 %v873_v30, %v460_v11  ;;  %1166 = vmatprep.mubr.f32.mxu0 %v481_v7  ;;  %p1475_p12 = scmp.ne.s32.totalorder %s859_s11, %s1474_s13  ;;  %p1480_p0 = scmp.lt.s32.totalorder %s1474_s13, %s1474_s13 }
 0x248   :  { %1167 = vmatmul.mubr.f32.gmra.mrb[28].mxu0 %v482_v9  ;;  %v484_v14 = vmax.f32 %v466_v10, 0.0 }
 0x249   :  { %v483_v13 = vmax.f32 %v461_v12, 0.0  ;;  %p1481_p1 = por %p1480_p0, %p1479_p13 }
 0x24b   :  { %1169 = vmatprep.mubr.f32.mxu0 %v483_v13  ;;  %p1482_p2 = pnand %p1481_p1, %p1475_p12 }
 0x24c   :  { %1170 = vmatmul.mubr.f32.gmra.mrb[30].mxu0 %v484_v14 }
 0x303   :  { %v1150_v19 = vpop.f32.mrb[16].mxu0 }
 0x304   :  { %v580_v20 = vadd.f32 %v1150_v19, %v874_v18  ;;  %v574_v21 = vpop.f32.mrb[17].mxu0 }
 0x305   :  { %v575_v22 = vadd.f32 %v874_v18, %v574_v21 }
 0x306   :  { %v654_v25 = vmax.f32 %v580_v20, 0.0 }
 0x307   :  { %v653_v23 = vmax.f32 %v575_v22, 0.0  ;;  %v1153_v24 = vpop.f32.mrb[18].mxu0 }
 0x308   :  { %v590_v26 = vadd.f32 %v1153_v24, %v874_v18  ;;  %v584_v27 = vpop.f32.mrb[19].mxu0 }
 0x309   :  { %v585_v28 = vadd.f32 %v874_v18, %v584_v27  ;;  %1204 = vmatprep.mubr.f32.mxu1 %v653_v23 }
 0x30a   :  { %1205 = vmatmul.mubr.f32.vlgmr.msra.gmra.mrb[16].mxu1 %v654_v25  ;;  %v656_v31 = vmax.f32 %v590_v26, 0.0 }
 0x30b   :  { %v655_v29 = vmax.f32 %v585_v28, 0.0  ;;  %v1156_v30 = vpop.f32.mrb[20].mxu0 }
 0x30c   :  { %v600_v32 = vadd.f32 %v1156_v30, %v874_v18  ;;  %v594_v33 = vpop.f32.mrb[21].mxu0 }
 0x30d   :  { %v595_v34 = vadd.f32 %v874_v18, %v594_v33  ;;  %1207 = vmatprep.mubr.f32.mxu1 %v655_v29 }
 0x30e   :  { %1208 = vmatmul.mubr.f32.gmra.mrb[18].mxu1 %v656_v31  ;;  %v658_v37 = vmax.f32 %v600_v32, 0.0 }
 0x30f   :  { %v657_v35 = vmax.f32 %v595_v34, 0.0  ;;  %v1159_v36 = vpop.f32.mrb[22].mxu0 }
 0x310   :  { %v610_v38 = vadd.f32 %v1159_v36, %v874_v18  ;;  %v604_v39 = vpop.f32.mrb[23].mxu0 }
 0x311   :  { %v605_v40 = vadd.f32 %v874_v18, %v604_v39  ;;  %1210 = vmatprep.mubr.f32.mxu1 %v657_v35 }
 0x312   :  { %1211 = vmatmul.mubr.f32.gmra.mrb[20].mxu1 %v658_v37  ;;  %v660_v43 = vmax.f32 %v610_v38, 0.0 }
 0x313   :  { %v659_v41 = vmax.f32 %v605_v40, 0.0  ;;  %v1162_v42 = vpop.f32.mrb[24].mxu0 }
 0x314   :  { %v620_v44 = vadd.f32 %v1162_v42, %v874_v18  ;;  %v614_v45 = vpop.f32.mrb[25].mxu0 }
 0x315   :  { %v615_v46 = vadd.f32 %v874_v18, %v614_v45  ;;  %1213 = vmatprep.mubr.f32.mxu1 %v659_v41 }
 0x316   :  { %1214 = vmatmul.mubr.f32.gmra.mrb[22].mxu1 %v660_v43  ;;  %v662_v49 = vmax.f32 %v620_v44, 0.0 }
 0x317   :  { %v661_v47 = vmax.f32 %v615_v46, 0.0  ;;  %v1165_v48 = vpop.f32.mrb[26].mxu0 }
 0x318   :  { %v630_v50 = vadd.f32 %v1165_v48, %v874_v18  ;;  %v624_v51 = vpop.f32.mrb[27].mxu0 }
 0x319   :  { %v625_v52 = vadd.f32 %v874_v18, %v624_v51  ;;  %1216 = vmatprep.mubr.f32.mxu1 %v661_v47 }
 0x31a   :  { %1217 = vmatmul.mubr.f32.gmra.mrb[24].mxu1 %v662_v49  ;;  %v664_v55 = vmax.f32 %v630_v50, 0.0 }
 0x31b   :  { %v663_v53 = vmax.f32 %v625_v52, 0.0  ;;  %v1168_v54 = vpop.f32.mrb[28].mxu0 }
 0x31c   :  { %v640_v56 = vadd.f32 %v1168_v54, %v874_v18  ;;  %v634_v57 = vpop.f32.mrb[29].mxu0 }
 0x31d   :  { %v635_v58 = vadd.f32 %v874_v18, %v634_v57  ;;  %1219 = vmatprep.mubr.f32.mxu1 %v663_v53 }
 0x31e   :  { %1220 = vmatmul.mubr.f32.gmra.mrb[26].mxu1 %v664_v55  ;;  %v666_v61 = vmax.f32 %v640_v56, 0.0 }
 0x31f   :  { %v665_v59 = vmax.f32 %v635_v58, 0.0  ;;  %v1171_v60 = vpop.f32.mrb[30].mxu0 }
 0x320   :  { %v650_v62 = vadd.f32 %v1171_v60, %v874_v18  ;;  %v644_v63 = vpop.f32.mrb[31].mxu0 }
 0x321   :  { %v645_v0 = vadd.f32 %v874_v18, %v644_v63  ;;  %1222 = vmatprep.mubr.f32.mxu1 %v665_v59 }
 0x322   :  { %1223 = vmatmul.mubr.f32.gmra.mrb[28].mxu1 %v666_v61  ;;  %v668_v2 = vmax.f32 %v650_v62, 0.0 }
 0x323   :  { %v667_v1 = vmax.f32 %v645_v0, 0.0 }
 0x325   :  { %1225 = vmatprep.mubr.f32.mxu1 %v667_v1 }
 0x326   :  { %1226 = vmatmul.mubr.f32.gmra.mrb[30].mxu1 %v668_v2 }
 0x3dd   :  { %v1206_v4 = vpop.f32.mrb[16].mxu1 }
 0x3de   :  { %v764_v5 = vadd.f32 %v1206_v4, %v875_v3  ;;  %v758_v6 = vpop.f32.mrb[17].mxu1 }
 0x3df   :  { %v759_v7 = vadd.f32 %v875_v3, %v758_v6 }
 0x3e0   :  { %838 = vst [vmem:[#allocation11 + $0x8] sm:$0xff] %v764_v5 }
 0x3e1   :  { %837 = vst [vmem:[#allocation11] sm:$0xff] %v759_v7  ;;  %v1209_v8 = vpop.f32.mrb[18].mxu1 }
 0x3e2   :  { %v774_v9 = vadd.f32 %v1209_v8, %v875_v3  ;;  %v768_v10 = vpop.f32.mrb[19].mxu1 }
 0x3e3   :  { %v769_v11 = vadd.f32 %v875_v3, %v768_v10 }
 0x3e4   :  { %840 = vst [vmem:[#allocation11 + $0x18] sm:$0xff] %v774_v9 }
 0x3e5   :  { %839 = vst [vmem:[#allocation11 + $0x10] sm:$0xff] %v769_v11  ;;  %v1212_v12 = vpop.f32.mrb[20].mxu1 }
 0x3e6   :  { %v784_v13 = vadd.f32 %v1212_v12, %v875_v3  ;;  %v778_v14 = vpop.f32.mrb[21].mxu1 }
 0x3e7   :  { %v779_v15 = vadd.f32 %v875_v3, %v778_v14 }
 0x3e8   :  { %842 = vst [vmem:[#allocation11 + $0x28] sm:$0xff] %v784_v13 }
 0x3e9   :  { %841 = vst [vmem:[#allocation11 + $0x20] sm:$0xff] %v779_v15  ;;  %v1215_v16 = vpop.f32.mrb[22].mxu1 }
 0x3ea   :  { %v794_v17 = vadd.f32 %v1215_v16, %v875_v3  ;;  %v788_v18 = vpop.f32.mrb[23].mxu1 }
 0x3eb   :  { %v789_v19 = vadd.f32 %v875_v3, %v788_v18 }
 0x3ec   :  { %844 = vst [vmem:[#allocation11 + $0x38] sm:$0xff] %v794_v17 }
 0x3ed   :  { %843 = vst [vmem:[#allocation11 + $0x30] sm:$0xff] %v789_v19  ;;  %v1218_v20 = vpop.f32.mrb[24].mxu1 }
 0x3ee   :  { %v804_v21 = vadd.f32 %v1218_v20, %v875_v3  ;;  %v798_v22 = vpop.f32.mrb[25].mxu1 }
 0x3ef   :  { %v799_v23 = vadd.f32 %v875_v3, %v798_v22 }
 0x3f0   :  { %846 = vst [vmem:[#allocation11 + $0x48] sm:$0xff] %v804_v21 }
 0x3f1   :  { %845 = vst [vmem:[#allocation11 + $0x40] sm:$0xff] %v799_v23  ;;  %v1221_v24 = vpop.f32.mrb[26].mxu1 }
 0x3f2   :  { %v814_v25 = vadd.f32 %v1221_v24, %v875_v3  ;;  %v808_v26 = vpop.f32.mrb[27].mxu1 }
 0x3f3   :  { %v809_v27 = vadd.f32 %v875_v3, %v808_v26 }
 0x3f4   :  { %848 = vst [vmem:[#allocation11 + $0x58] sm:$0xff] %v814_v25 }
 0x3f5   :  { %847 = vst [vmem:[#allocation11 + $0x50] sm:$0xff] %v809_v27  ;;  %v1224_v28 = vpop.f32.mrb[28].mxu1 }
 0x3f6   :  { %v824_v29 = vadd.f32 %v1224_v28, %v875_v3  ;;  %v818_v30 = vpop.f32.mrb[29].mxu1 }
 0x3f7   :  { %v819_v31 = vadd.f32 %v875_v3, %v818_v30 }
 0x3f8   :  { %850 = vst [vmem:[#allocation11 + $0x68] sm:$0xff] %v824_v29 }
 0x3f9   :  { %849 = vst [vmem:[#allocation11 + $0x60] sm:$0xff] %v819_v31  ;;  %v1227_v32 = vpop.f32.mrb[30].mxu1 }
 0x3fa   :  { %v834_v33 = vadd.f32 %v1227_v32, %v875_v3  ;;  %v828_v34 = vpop.f32.mrb[31].mxu1 }
 0x3fb   :  { %v829_v35 = vadd.f32 %v875_v3, %v828_v34 }
 0x3fc   :  { %852 = vst [vmem:[#allocation11 + $0x78] sm:$0xff] %v834_v33 }
 0x3fd   :  { %851 = vst [vmem:[#allocation11 + $0x70] sm:$0xff] %v829_v35 }
 0x3fe   :  { %1485 = shalt.err (!%p1482_p2)
}
 0x3ff   :  { %s1486_s14 = scalar_lea.hbm %s1687_s9, 2048 }
 0x400   :  { %p1487_p3 = scmp.ne.s32.totalorder %s1687_s9, %s1486_s14  ;;  %p1490_p4 = scmp.lt.u32.totalorder %s1486_s14, %s1687_s9 }
 0x402   :  { %p1492_p5 = pnand %p1490_p4, %p1487_p3 }
 0x404   :  { %1495 = shalt.err (!%p1492_p5)
}
 0x405   :  { %864 = dma.vmem_to_hbm [thread:$0]  %s859_s11, 2048, %s1687_s9, [#allocation4], %s1506_s21, %s1506_s21, %s1507_s22  }
 0x406   :  { %1502 = dma.done.wait [#allocation4], 2048  }
 0x407   :  { %1503 = vsyncadd [#allocation4], 4294965248 }
 0x408   :  { %868 = vsyncpa [#allocation3], 1 }
 0x409   :  { %869 = vsyncpa [#allocation6], 1 }
 0x40a   :  { %870 = vsyncpa [#allocation9], 1 }
 0x40b   :  { %871 = vsyncpa [#allocation4], 1 }

</bundles_post_ra>
